<compile_context>
chip_gen: v7x
topology: tpu7x:2x2x1
jax: 0.10.0
libtpu: 0.0.40
codegen_flags: <defaults>
</compile_context>

<pallas_src>
import jax
import jax.numpy as jnp
from jax.experimental import pallas as pl
from jax.experimental.pallas import tpu as pltpu


def _scale_rows_kernel(x_ref, f_ref, o_ref):
    """out[r, c] = x[r, c] * factor[r]  (factor broadcast across the lane axis)."""
    # Only the (blk_r, 1) factor column is cast; the slab stays in its native dtype.
    o_ref[...] = (x_ref[...] * f_ref[...].astype(x_ref.dtype)).astype(o_ref.dtype)


# ~2 MiB per tile: measured >=85% of HBM roofline for mem-bound streaming, while
# double-buffered input + output (~4x tile) stays ~8 MiB, well inside every
# generation's scoped-VMEM default (16 MiB v5e / 32 MiB v6e-v7x).
_TARGET_TILE_BYTES = 2 * 1024 * 1024


def _pick_tiles(rows, cols, itemsize):
    """Choose a (blk_r, blk_c) tile that divides (rows, cols), respects the packed
    sublane / 128-lane alignment for this dtype, and is ~_TARGET_TILE_BYTES.
    Falls back to full extents when alignment or divisibility cannot be met."""
    packing = max(1, 4 // itemsize)          # f32 -> 1, bf16 -> 2, int8/fp8 -> 4
    row_align = 8 * packing
    lane = 128

    # ---- columns: keep the output lane-dense; only split when a full-width,
    # minimally-tall tile would already exceed the VMEM target. ----
    if cols * itemsize <= _TARGET_TILE_BYTES or cols % lane != 0:
        blk_c = cols                          # full width (small, or ragged -> full-extent OK)
    else:
        max_c = max(lane, (_TARGET_TILE_BYTES // (row_align * itemsize)) // lane * lane)
        blk_c = min(cols, max_c)
        blk_c -= blk_c % lane
        blk_c = max(lane, blk_c)
        while cols % blk_c:
            blk_c -= lane

    # ---- rows: largest aligned divisor of `rows` keeping the tile near the target. ----
    if rows % row_align != 0:
        blk_r = rows                          # full-extent row block for odd small row counts
    else:
        blk_r = min(rows, max(row_align, _TARGET_TILE_BYTES // max(1, blk_c * itemsize)))
        blk_r -= blk_r % row_align
        blk_r = max(row_align, blk_r)
        while rows % blk_r:
            blk_r -= row_align

    return blk_r, blk_c


def _channel_factor(key, n, c, dropout_rate, multisample):
    """Per-(batch, channel) multiplicative factor implementing (multisample) channel dropout."""
    if not 0.0 <= dropout_rate <= 1.0:
        raise ValueError(f"dropout_rate must be in [0, 1], got {dropout_rate}")
    keep_prob = 1.0 - dropout_rate
    if keep_prob <= 0.0:                     # p == 1: everything is dropped
        return jnp.zeros((n * c, 1), jnp.float32)
    scale = 1.0 / keep_prob

    multisample = 2 if multisample is True else multisample
    if isinstance(multisample, float):
        multisample = [multisample, 1.0 - multisample]

    if multisample is False:
        keep = jax.random.bernoulli(key, keep_prob, (n, c)).astype(jnp.float32)
        factor = keep * scale
    elif isinstance(multisample, int):
        # n independent dropouts of the whole batch, averaged.
        keep = jax.random.bernoulli(key, keep_prob, (multisample, n, c)).astype(jnp.float32)
        factor = keep.mean(axis=0) * scale
    elif isinstance(multisample, (tuple, list)):
        # Batch split into parts, each passed through an independent dropout, concatenated.
        if all(isinstance(item, int) for item in multisample):
            sizes = list(multisample)
            if sum(sizes) != n:
                raise ValueError(f"Sequence of ints must sum up to the batch size, got {multisample}")
        elif all(isinstance(item, float) for item in multisample):
            if abs(sum(multisample) - 1.0) > 1e-6:
                raise ValueError(f"Sequence of floats must sum up to one, got {multisample}")
            sizes = [round(n * item) for item in multisample[:-1]]
            sizes.append(n - sum(sizes))
        else:
            raise ValueError(f"Elements of multisample must be all ints or all floats, got {multisample}")
        parts = []
        for idx, size in enumerate(sizes):
            part_key = jax.random.fold_in(key, idx)
            keep = jax.random.bernoulli(part_key, keep_prob, (size, c)).astype(jnp.float32)
            parts.append(keep * scale)
        factor = jnp.concatenate(parts, axis=0)
    else:
        raise ValueError(f"Unknown type of multisample: {multisample}")

    return factor.reshape(n * c, 1)


def dropout(x, key, *, dropout_rate=0.0, multisample=False):
    """Training-mode forward of batchflow `Dropout` for (N, C, *spatial) inputs
    (channel dropout, i.e. the nn.Dropout2d / nn.Dropout3d layers the module picks)."""
    # TODO(synk): the element-wise nn.Dropout path (get_num_dims(inputs) == 1) is not
    # implemented here; only the channel-dropout layers used for 4-D/5-D inputs are.
    if x.ndim < 3:
        raise NotImplementedError("expect (N, C, *spatial) input with at least one spatial dim")

    n, c = x.shape[0], x.shape[1]
    cols = 1
    for d in x.shape[2:]:
        cols *= d
    rows = n * c

    factor = _channel_factor(key, n, c, float(dropout_rate), multisample)
    x2 = x.reshape(rows, cols)
    blk_r, blk_c = _pick_tiles(rows, cols, x2.dtype.itemsize)

    out2 = pl.pallas_call(
        _scale_rows_kernel,
        out_shape=jax.ShapeDtypeStruct((rows, cols), x.dtype),
        grid=(rows // blk_r, cols // blk_c),
        in_specs=[
            pl.BlockSpec((blk_r, blk_c), lambda i, j: (i, j)),   # data slab (lane-dense)
            pl.BlockSpec((blk_r, 1), lambda i, j: (i, 0)),       # per-row factor (tiny)
        ],
        out_specs=pl.BlockSpec((blk_r, blk_c), lambda i, j: (i, j)),
        compiler_params=pltpu.CompilerParams(
            # Tiles are fully independent -> shard across both v7x TensorCores.
            dimension_semantics=("parallel", "parallel"),
        ),
    )(x2, factor)

    return out2.reshape(x.shape)


if __name__ == "__main__":
    key = jax.random.PRNGKey(0)
    x = jax.random.normal(key, (2, 4, 16, 16), dtype=jnp.float32)   # NCHW
    rate = 0.3
    scale = 1.0 / (1.0 - rate)

    out_single = jax.block_until_ready(
        dropout(x, jax.random.PRNGKey(42), dropout_rate=rate, multisample=False))
    out_ms = jax.block_until_ready(
        dropout(x, jax.random.PRNGKey(1234), dropout_rate=rate, multisample=True))
    out_split = jax.block_until_ready(
        dropout(x, jax.random.PRNGKey(7), dropout_rate=rate, multisample=[1, 1]))

    xc = x.reshape(8, -1)

    # Single pass: every (n, c) channel is either zeroed or scaled by 1/(1-p).
    oc = out_single.reshape(8, -1)
    ok = (jnp.all(oc == 0.0, axis=1)
          | jnp.all(jnp.abs(oc - xc * scale) < 1e-5, axis=1))
    assert bool(jnp.all(ok)), "Dropout2d channel semantics violated"

    # multisample=True (2 averaged dropouts): per-channel factor in {0, scale/2, scale}.
    mc = out_ms.reshape(8, -1)
    ok_ms = jnp.zeros((8,), dtype=bool)
    for kept in (0, 1, 2):
        ok_ms = ok_ms | jnp.all(jnp.abs(mc - xc * (scale * kept / 2.0)) < 1e-5, axis=1)
    assert bool(jnp.all(ok_ms)), "multisample averaging semantics violated"

    # Batch-split multisample: still per-channel zero-or-scale.
    spc = out_split.reshape(8, -1)
    ok_sp = (jnp.all(spc == 0.0, axis=1)
             | jnp.all(jnp.abs(spc - xc * scale) < 1e-5, axis=1))
    assert bool(jnp.all(ok_sp)), "batch-split dropout semantics violated"

    # bf16 path (packed sublanes, native-dtype multiply): zero-or-scaled with bf16 tolerance.
    xb = x.astype(jnp.bfloat16)
    out_b = jax.block_until_ready(
        dropout(xb, jax.random.PRNGKey(99), dropout_rate=rate, multisample=False))
    xbf = xb.astype(jnp.float32).reshape(8, -1)
    obf = out_b.astype(jnp.float32).reshape(8, -1)
    tol = 2e-2 * (jnp.abs(xbf) * scale + 1e-2)
    ok_b = (jnp.all(obf == 0.0, axis=1)
            | jnp.all(jnp.abs(obf - xbf * scale) <= tol, axis=1))
    assert bool(jnp.all(ok_b)), "bf16 channel dropout semantics violated"
    assert out_b.shape == x.shape and out_b.dtype == jnp.bfloat16

    assert out_single.shape == x.shape and out_single.dtype == x.dtype
    assert out_ms.shape == x.shape and out_ms.dtype == x.dtype
    assert out_split.shape == x.shape and out_split.dtype == x.dtype
    print("KERNEL_OK")
</pallas_src>

<mosaic_0001>
module attributes {stable_mosaic.version = 11 : i64} {
  func.func @_scale_rows_kernel(%arg0: i32, %arg1: i32, %arg2: memref<8x256xf32, #tpu.memory_space<vmem>>, %arg3: memref<8x1xf32, #tpu.memory_space<vmem>>, %arg4: memref<8x256xf32, #tpu.memory_space<vmem>>) attributes {dimension_semantics = [#tpu.dimension_semantics<parallel>, #tpu.dimension_semantics<parallel>], iteration_bounds = array<i64: 1, 1>, scalar_prefetch = 0 : i64, scratch_operands = 0 : i64, tpu.core_type = #tpu.core_type<tc>, window_params = [{transform_indices = @transform_0, window_bounds = array<i64: 8, 256>}, {transform_indices = @transform_1, window_bounds = array<i64: 8, 1>}, {transform_indices = @transform_2, window_bounds = array<i64: 8, 256>}]} {
    %c0 = arith.constant 0 : index
    %c0_0 = arith.constant 0 : index
    %0 = vector.load %arg2[%c0, %c0_0] : memref<8x256xf32, #tpu.memory_space<vmem>>, vector<8x256xf32>
    %c0_1 = arith.constant 0 : index
    %c0_2 = arith.constant 0 : index
    %1 = vector.load %arg3[%c0_1, %c0_2] : memref<8x1xf32, #tpu.memory_space<vmem>>, vector<8x1xf32>
    %2 = vector.broadcast %1 : vector<8x1xf32> to vector<8x256xf32>
    %3 = arith.mulf %0, %2 : vector<8x256xf32>
    %c0_3 = arith.constant 0 : index
    %c0_4 = arith.constant 0 : index
    %4 = vector.load %arg4[%c0_3, %c0_4] : memref<8x256xf32, #tpu.memory_space<vmem>>, vector<8x256xf32>
    tpu.vector_store %arg4[%c0_3, %c0_4], %3 {strides = array<i32>} : memref<8x256xf32, #tpu.memory_space<vmem>>, vector<8x256xf32>,
    return
  }
  func.func @transform_0(%arg0: i32, %arg1: i32) -> (i32, i32) {
    %c0_i32 = arith.constant 0 : i32
    return %arg0, %arg1 : i32, i32
  }
  func.func @transform_1(%arg0: i32, %arg1: i32) -> (i32, i32) {
    %c0_i32 = arith.constant 0 : i32
    %c0_i32_0 = arith.constant 0 : i32
    return %arg0, %c0_i32 : i32, i32
  }
  func.func @transform_2(%arg0: i32, %arg1: i32) -> (i32, i32) {
    %c0_i32 = arith.constant 0 : i32
    return %arg0, %arg1 : i32, i32
  }
}

</mosaic_0001>

<bundles_post_ra>
// kernel: tpu_custom_call.1
= control target key start
LH: loop header
LB: loop body
LE: loop exit
PB: predicated region body
PF: predicated region fallthrough
CT: control target
= control target key end

     0   :  { %7 = vsyncpa [#allocation3], 0  ;;  %s148_s0 = inlined_call_operand.hbm [shape: f32[8,256], index: 0, kind: input, shape index: {}]   ;;  %s149_s1 = inlined_call_operand.vmem [shape: f32[8,1], index: 1, kind: input, shape index: {}]   ;;  %s150_s2 = inlined_call_operand.hbm [shape: f32[8,256], index: 2, kind: output, shape index: {}]  }
   0x1   :  { %8 = vsyncpa [#allocation4], 0  ;;  %s103_s9 = smov [#allocation2]   ;;  %s55_s13 = scalar_lea.hbm %s148_s0, 256 }
   0x2   :  { %s15_s10 = sshll.u32 %s103_s9, 4  ;;  %p56_p0 = scmp.ne.s32.totalorder %s148_s0, %s55_s13  ;;  %s16_s10 = int_to_ptr.vmem [resolvable:$true] %s15_s10 }
   0x3   :  { %p59_p1 = scmp.lt.u32.totalorder %s55_s13, %s148_s0 }
   0x5   :  { %p61_p2 = pnand %p59_p1, %p56_p0 }
   0x7   :  { %64 = shalt.err (!%p61_p2)
}
   0x8   :  { %s65_s18 = scalar_lea.vmem %s16_s10, 256  ;;  %p70_p4 = scmp.lt.s32.totalorder %s16_s10, %s16_s10 }
   0x9   :  { %p66_p3 = scmp.ne.s32.totalorder %s16_s10, %s65_s18  ;;  %p71_p5 = scmp.lt.s32.totalorder %s65_s18, %s65_s18 }
   0xb   :  { %p72_p6 = por %p71_p5, %p70_p4 }
   0xd   :  { %p73_p7 = pnand %p72_p6, %p66_p3 }
   0xf   :  { %76 = shalt.err (!%p73_p7)
}
  0x10   :  { %18 = dma.hbm_to_vmem [thread:$0]  %s148_s0, 256, %s16_s10, [#allocation3]  }
  0x11   :  { %99 = dma.done.wait [#allocation3], 256  }
  0x12   :  { %100 = vsyncadd [#allocation3], 4294967040  ;;  %v104_v0 = vmov 0   ;;  %v26_v1 = vld [vmem:[%s149_s1] sm:$0xff]  ;;  %v25_v3 = vld [vmem:[#allocation2 + $0x8] sm:$0xff]  ;;  %s105_s23 = smov [#allocation5]  }
  0x13   :  { %54 = vset.pattern.permute.xlu0 %v104_v0  ;;  %v24_v2 = vld [vmem:[#allocation2] sm:$0xff]  ;;  %s42_s24 = sshll.u32 %s105_s23, 4  ;;  %s43_s24 = int_to_ptr.vmem [resolvable:$true] %s42_s24 }
  0x14   :  { %29 = vperm.xlu0 %54, %v26_v1   ;;  %s77_s0 = scalar_lea.vmem %s43_s24, 256  ;;  %p82_p9 = scmp.lt.s32.totalorder %s43_s24, %s43_s24 }
  0x15   :  { %p78_p8 = scmp.ne.s32.totalorder %s43_s24, %s77_s0  ;;  %p83_p10 = scmp.lt.s32.totalorder %s77_s0, %s77_s0 }
  0x17   :  { %p84_p11 = por %p83_p10, %p82_p9 }
  0x19   :  { %p85_p12 = pnand %p84_p11, %p78_p8 }
  0x93   :  { %v30_v4 = vpop.permute.xlu0 %29 }
  0x94   :  { %v32_v5 = vmul.f32 %v30_v4, %v24_v2  ;;  %v33_v6 = vmul.f32 %v30_v4, %v25_v3 }
  0x96   :  { %34 = vst [vmem:[#allocation5] sm:$0xff] %v32_v5  ;;  %35 = vst [vmem:[#allocation5 + $0x8] sm:$0xff] %v33_v6 }
  0x97   :  { %88 = shalt.err (!%p85_p12)
}
  0x98   :  { %s89_s26 = scalar_lea.hbm %s150_s2, 256 }
  0x99   :  { %p90_p13 = scmp.ne.s32.totalorder %s150_s2, %s89_s26  ;;  %p93_p0 = scmp.lt.u32.totalorder %s89_s26, %s150_s2 }
  0x9b   :  { %p95_p1 = pnand %p93_p0, %p90_p13 }
  0x9d   :  { %98 = shalt.err (!%p95_p1)
}
  0x9e   :  { %45 = dma.vmem_to_hbm [thread:$0]  %s43_s24, 256, %s150_s2, [#allocation4]  }
  0x9f   :  { %101 = dma.done.wait [#allocation4], 256  }
  0xa0   :  { %102 = vsyncadd [#allocation4], 4294967040 }
  0xa1   :  { %49 = vsyncpa [#allocation3], 1 }
  0xa2   :  { %50 = vsyncpa [#allocation4], 1 }

</bundles_post_ra>
